<compile_context>
chip_gen: v6e
topology: v6e:2x2x1
jax: 0.10.0
libtpu: 0.0.40
codegen_flags: <defaults>
</compile_context>

<pallas_src>
import jax
import jax.numpy as jnp
import numpy as np
from jax.experimental import pallas as pl
from jax.experimental.pallas import tpu as pltpu

EPS = 1e-5  # torch.nn.LayerNorm default


def _layernorm_kernel(x_ref, g_ref, b_ref, o_ref):
    # x_ref: (TM, D) tile of flattened rows, D lane-dense.
    # g_ref/b_ref: (1, D) LayerNorm affine params (f32).
    inv_d = 1.0 / x_ref.shape[-1]
    # Mean pass: consume x directly from the ref (no long-lived f32 copy of x).
    mean = jnp.sum(x_ref[...].astype(jnp.float32), axis=-1, keepdims=True) * inv_d
    # Single full-tile f32 temporary: centered values.
    xc = x_ref[...].astype(jnp.float32) - mean
    # Centered two-pass variance (no E[x^2]-mean^2 cancellation).
    var = jnp.sum(xc * xc, axis=-1, keepdims=True) * inv_d
    inv = jax.lax.rsqrt(var + EPS)
    o_ref[...] = (xc * inv * g_ref[...] + b_ref[...]).astype(o_ref.dtype)


def _round_up(v, m):
    return ((v + m - 1) // m) * m


def layer_norm(x, gamma, beta):
    """LayerNorm over the last dim of x (any leading shape) via Pallas."""
    orig_shape = x.shape
    D = orig_shape[-1]
    x2d = x.reshape(-1, D)            # rows are independent -> flatten & tile
    M = x2d.shape[0]

    itemsize = jnp.dtype(x.dtype).itemsize
    # Dtype-aware sublane multiple: 8 for 4-byte, 16 for 2-byte, 32 for 1-byte.
    sub = {4: 8, 2: 16, 1: 32}.get(itemsize, 8)

    # Byte-targeted tile: aim for ~2 MiB per (tm, D) input block (this kernel
    # is pure HBM bandwidth; big blocks amortize per-step overhead).
    target_bytes = 2 * 1024 * 1024
    tm = max(sub, (target_bytes // max(1, D * itemsize)) // sub * sub)

    # Generation-aware VMEM cap (v7x has 64 MiB/TC); leave headroom.
    try:
        vmem_cap = int(pltpu.get_tpu_info().vmem_capacity_bytes)
    except Exception:
        vmem_cap = 64 * 1024 * 1024   # conservative (v7x) fallback
    usable = max(16 * 1024 * 1024, vmem_cap - 16 * 1024 * 1024)
    # Budget: double-buffered in + out tiles at input dtype, plus f32 temps.
    bytes_per_row = D * (4 * itemsize + 3 * 4)
    max_tm_vmem = max(sub, (usable // bytes_per_row) // sub * sub)
    tm = min(tm, max_tm_vmem)

    # Keep >= ~4 grid steps so the "parallel" axis can shard across the two
    # TensorCores on v7x (harmless on single-TC v5e/v6e).
    min_steps = 4
    tm = min(tm, max(sub, _round_up(pl.cdiv(M, min_steps), sub)))

    grid_m = pl.cdiv(M, tm)   # no host-side pad; Pallas masks the edge block

    g2d = gamma.reshape(1, D).astype(jnp.float32)
    b2d = beta.reshape(1, D).astype(jnp.float32)

    cost = pl.CostEstimate(
        flops=int(8 * M * D),
        transcendentals=int(M),
        bytes_accessed=int(2 * M * D * itemsize + 2 * D * 4),
    )

    out = pl.pallas_call(
        _layernorm_kernel,
        out_shape=jax.ShapeDtypeStruct((M, D), x.dtype),
        grid=(grid_m,),
        in_specs=[
            pl.BlockSpec((tm, D), lambda i: (i, 0)),
            pl.BlockSpec((1, D), lambda i: (0, 0)),
            pl.BlockSpec((1, D), lambda i: (0, 0)),
        ],
        out_specs=pl.BlockSpec((tm, D), lambda i: (i, 0)),
        compiler_params=pltpu.CompilerParams(
            dimension_semantics=("parallel",),
            vmem_limit_bytes=int(usable),
        ),
        cost_estimate=cost,
    )(x2d, g2d, b2d)

    return out.reshape(orig_shape)


def pre_norm(x, gamma, beta, fn=None):
    """PreNorm.forward: fn(LayerNorm(x))."""
    # TODO(synk): `fn` is an arbitrary wrapped module (Attention/FeedForward)
    # with no definition in the spec; the biggest further win would be fusing
    # this LayerNorm into fn's first matmul so the normalized activation never
    # round-trips HBM. Here fn is applied as a plain callable (identity if None).
    y = layer_norm(x, gamma, beta)
    return y if fn is None else fn(y)


def _reference(x, gamma, beta):
    x = x.astype(jnp.float32)
    mean = x.mean(axis=-1, keepdims=True)
    var = ((x - mean) ** 2).mean(axis=-1, keepdims=True)
    return (x - mean) / jnp.sqrt(var + EPS) * gamma + beta


if __name__ == "__main__":
    # Small shapes consistent with the module: x is (batch, seq, dim).
    # S=17 makes M=34 non-divisible by the row tile, exercising the
    # pad-free edge-block path.
    B, S, D = 2, 17, 128
    key = jax.random.PRNGKey(0)
    kx, kg, kb = jax.random.split(key, 3)
    x = jax.random.normal(kx, (B, S, D), dtype=jnp.float32)
    gamma = 1.0 + 0.1 * jax.random.normal(kg, (D,), dtype=jnp.float32)
    beta = 0.1 * jax.random.normal(kb, (D,), dtype=jnp.float32)

    # f32 path
    out = jax.block_until_ready(pre_norm(x, gamma, beta))
    ref = _reference(x, gamma, beta)
    assert out.shape == x.shape, out.shape
    np.testing.assert_allclose(np.asarray(out), np.asarray(ref),
                               atol=1e-4, rtol=1e-4)

    # bf16 I/O path (halves HBM bytes; in-kernel math stays f32)
    x_bf = x.astype(jnp.bfloat16)
    out_bf = jax.block_until_ready(pre_norm(x_bf, gamma, beta))
    ref_bf = _reference(x_bf, gamma, beta)
    assert out_bf.dtype == jnp.bfloat16
    np.testing.assert_allclose(np.asarray(out_bf, dtype=np.float32),
                               np.asarray(ref_bf), atol=5e-2, rtol=5e-2)

    print("KERNEL_OK")
</pallas_src>

<mosaic_0001>
module attributes {stable_mosaic.version = 11 : i64} {
  func.func @_layernorm_kernel(%arg0: i32, %arg1: memref<16x128xf32, #tpu.memory_space<vmem>>, %arg2: memref<1x128xf32, #tpu.memory_space<vmem>>, %arg3: memref<1x128xf32, #tpu.memory_space<vmem>>, %arg4: memref<16x128xf32, #tpu.memory_space<vmem>>) attributes {dimension_semantics = [#tpu.dimension_semantics<parallel>], iteration_bounds = array<i64: 3>, scalar_prefetch = 0 : i64, scratch_operands = 0 : i64, tpu.core_type = #tpu.core_type<tc>, window_params = [{transform_indices = @transform_0, window_bounds = array<i64: 16, 128>}, {pipeline_mode = #tpu.pipeline_mode<synchronous>, transform_indices = @transform_1, window_bounds = array<i64: 1, 128>}, {pipeline_mode = #tpu.pipeline_mode<synchronous>, transform_indices = @transform_2, window_bounds = array<i64: 1, 128>}, {transform_indices = @transform_3, window_bounds = array<i64: 16, 128>}]} {
    %c0 = arith.constant 0 : index
    %c0_0 = arith.constant 0 : index
    %0 = vector.load %arg1[%c0, %c0_0] : memref<16x128xf32, #tpu.memory_space<vmem>>, vector<16x128xf32>
    %cst = arith.constant dense<0.000000e+00> : vector<16xf32>
    %1 = vector.multi_reduction <add>, %0, %cst [1] : vector<16x128xf32> to vector<16xf32>
    %2 = vector.shape_cast %1 : vector<16xf32> to vector<16x1xf32>
    %cst_1 = arith.constant 7.812500e-03 : f32
    %3 = vector.broadcast %cst_1 : f32 to vector<16x1xf32>
    %4 = arith.mulf %2, %3 : vector<16x1xf32>
    %c0_2 = arith.constant 0 : index
    %c0_3 = arith.constant 0 : index
    %5 = vector.load %arg1[%c0_2, %c0_3] : memref<16x128xf32, #tpu.memory_space<vmem>>, vector<16x128xf32>
    %6 = vector.broadcast %4 : vector<16x1xf32> to vector<16x128xf32>
    %7 = arith.subf %5, %6 : vector<16x128xf32>
    %8 = arith.mulf %7, %7 : vector<16x128xf32>
    %cst_4 = arith.constant dense<0.000000e+00> : vector<16xf32>
    %9 = vector.multi_reduction <add>, %8, %cst_4 [1] : vector<16x128xf32> to vector<16xf32>
    %10 = vector.shape_cast %9 : vector<16xf32> to vector<16x1xf32>
    %cst_5 = arith.constant 7.812500e-03 : f32
    %11 = vector.broadcast %cst_5 : f32 to vector<16x1xf32>
    %12 = arith.mulf %10, %11 : vector<16x1xf32>
    %cst_6 = arith.constant 9.99999974E-6 : f32
    %13 = vector.broadcast %cst_6 : f32 to vector<16x1xf32>
    %14 = arith.addf %12, %13 : vector<16x1xf32>
    %15 = math.rsqrt %14 : vector<16x1xf32>
    %16 = vector.broadcast %15 : vector<16x1xf32> to vector<16x128xf32>
    %17 = arith.mulf %7, %16 : vector<16x128xf32>
    %c0_7 = arith.constant 0 : index
    %c0_8 = arith.constant 0 : index
    %18 = vector.load %arg2[%c0_7, %c0_8] : memref<1x128xf32, #tpu.memory_space<vmem>>, vector<1x128xf32>
    %19 = vector.broadcast %18 : vector<1x128xf32> to vector<16x128xf32>
    %20 = arith.mulf %17, %19 : vector<16x128xf32>
    %c0_9 = arith.constant 0 : index
    %c0_10 = arith.constant 0 : index
    %21 = vector.load %arg3[%c0_9, %c0_10] : memref<1x128xf32, #tpu.memory_space<vmem>>, vector<1x128xf32>
    %22 = vector.broadcast %21 : vector<1x128xf32> to vector<16x128xf32>
    %23 = arith.addf %20, %22 : vector<16x128xf32>
    %c0_11 = arith.constant 0 : index
    %c0_12 = arith.constant 0 : index
    %24 = vector.load %arg4[%c0_11, %c0_12] : memref<16x128xf32, #tpu.memory_space<vmem>>, vector<16x128xf32>
    tpu.vector_store %arg4[%c0_11, %c0_12], %23 {strides = array<i32>} : memref<16x128xf32, #tpu.memory_space<vmem>>, vector<16x128xf32>,
    return
  }
  func.func @transform_0(%arg0: i32) -> (i32, i32) {
    %c0_i32 = arith.constant 0 : i32
    %c0_i32_0 = arith.constant 0 : i32
    return %arg0, %c0_i32 : i32, i32
  }
  func.func @transform_1(%arg0: i32) -> (i32, i32) {
    %c0_i32 = arith.constant 0 : i32
    %c0_i32_0 = arith.constant 0 : i32
    %c0_i32_1 = arith.constant 0 : i32
    return %c0_i32, %c0_i32_0 : i32, i32
  }
  func.func @transform_2(%arg0: i32) -> (i32, i32) {
    %c0_i32 = arith.constant 0 : i32
    %c0_i32_0 = arith.constant 0 : i32
    %c0_i32_1 = arith.constant 0 : i32
    return %c0_i32, %c0_i32_0 : i32, i32
  }
  func.func @transform_3(%arg0: i32) -> (i32, i32) {
    %c0_i32 = arith.constant 0 : i32
    %c0_i32_0 = arith.constant 0 : i32
    return %arg0, %c0_i32 : i32, i32
  }
}

</mosaic_0001>

<bundles_post_ra>
// kernel: tpu_custom_call.1
= control target key start
LH: loop header
LB: loop body
LE: loop exit
PB: predicated region body
PF: predicated region fallthrough
CT: control target
= control target key end

     0   :  { %8 = vsyncpa [#allocation3], 0  ;;  %s708_s0 = inlined_call_operand.hbm [shape: f32[34,128], index: 0, kind: input, shape index: {}]   ;;  %s709_s1 = inlined_call_operand.vmem [shape: f32[1,128], index: 1, kind: input, shape index: {}]   ;;  %s710_s2 = inlined_call_operand.vmem [shape: f32[1,128], index: 2, kind: input, shape index: {}]   ;;  %s711_s3 = inlined_call_operand.hbm [shape: f32[34,128], index: 3, kind: output, shape index: {}]  }
   0x1   :  { %10 = vsyncpa [#allocation3 + $0x1], 0 }
   0x2   :  { %11 = vsyncpa [#allocation4], 0 }
   0x3   :  { %13 = vsyncpa [#allocation4 + $0x1], 0  ;;  %s533_s12 = smov 0   ;;  %s535_s13 = smov 0  }
   0x4   :  { %s537_s14 = smov 0   ;;  %s539_s15 = smov 0  }
   0x5 LB: > { %s554_s16 = sadd.s32 4294967295, %s505_s15   ;;  %s342_s17 = sadd.s32 4294967294, %s505_s15   ;;  %s505_s15 = sphi %s539_s15, %s719_s15   ;;  %s501_s14 = sphi %s537_s14, %s718_s14   ;;  %s497_s13 = sphi %s535_s13, %s717_s13   ;;  %s493_s12 = sphi %s533_s12, %s716_s12  }
   0x6   : > { %s558_s18 = sadd.s32 1, %s505_s15   ;;  %s26_s19 = sadd.s32 1, %s501_s14 }
   0x7   : > { %s23_s20 = ssub.s32 %s505_s15, %s558_s18  ;;  %p33_p0 = scmp.ne.s32.totalorder %s501_s14, %s497_s13 }
   0x8   : > { %p24_p1 = scmp.eq.s32.totalorder %s23_s20, 0  ;;  %p34_p2 = scmp.eq.s32.totalorder %s505_s15, 0 }
   0x9   : > { %p39_p3 = scmp.ne.s32.totalorder %s497_s13, %s493_s12  ;;  %p40_p4 = scmp.eq.s32.totalorder %s554_s16, 0 }
   0xa   : > { %s570_s21 = scalar_select %p24_p1, %s501_s14, %s26_s19  }
   0xb   : > { %p35_p5 = por %p34_p2, %p33_p0  ;;  %p572_p6 = por %p40_p4, %p39_p3 }
   0xc   : > { %p105_p7 = scmp.eq.s32.totalorder %s554_s16, 2  ;;  %p111_p8 = scmp.eq.s32.totalorder %s342_s17, 2 }
   0xd   : > { %p344_p11 = scmp.ge.s32.totalorder %s505_s15, 3 }
   0xe   : > { %p577_p9 = por %p105_p7, %p33_p0  ;;  %p581_p10 = por %p111_p8, %p39_p3 }
   0xf   : > { %133 = sbr.rel (%p344_p11) target bundleno = 52 (0x34), region = 24 }
  0x10   : > { %s714_s24 = scalar_select %p581_p10, 1, 0 }
  0x14   : > { %136 = sbr.rel (!%p35_p5) target bundleno = 52 (0x34), region = 28  ;;  %s137_s25 = sand.u32 (%p35_p5), 1, %s501_s14  }
  0x15   : > { %s346_s26 = sshll.u32 (%p35_p5), %s505_s15, 1  ;;  %s345_s27 = sshll.u32 (%p35_p5), %s137_s25, 4 }
  0x16   : > { %s143_s28 = ssub.s32 (%p35_p5), 5, %s346_s26  ;;  %s591_s4 = scalar_lea.sflag (%p35_p5), [#allocation3], %s137_s25 }
  0x17   : > { %p144_p12 = scmp.lt.s32.totalorder (%p35_p5), %s143_s28, 2  ;;  %s141_s5 = scalar_lea.vmem (%p35_p5), [#allocation2], %s345_s27 }
  0x19   : > { %s721_s28 = smov (!%p144_p12, %s143_s28), 2 }
  0x1a   : > { %s588_s29 = sshll.u32 %s721_s28, 7 }
  0x1b   : > { %s148_s30 = ssub.s32 256, %s588_s29 }
  0x1c   : > { %149 = vsyncadd %s591_s4, %s148_s30  ;;  %p348_p13 = scmp.ne.s32.totalorder %s588_s29, 0  ;;  %s366_s6 = sshll.u32 %s505_s15, 8 }
  0x1d   : > { %s599_s9 = scalar_lea.hbm %s708_s0, %s366_s6  ;;  %s154_s10 = sshll.u32 %s141_s5, 4  ;;  %s601_s10 = int_to_ptr.vmem [resolvable:$true] %s154_s10 }
  0x1e   : > { %s415_s11 = scalar_lea.hbm %s599_s9, %s588_s29  ;;  %s419_s20 = scalar_lea.hbm %s708_s0, 640 }
  0x1f   : > { %p416_p0 = scmp.ne.s32.totalorder %s599_s9, %s415_s11  ;;  %p420_p3 = scmp.lt.s32.totalorder %s599_s9, %s708_s0 }
  0x20   : > { %p421_p4 = scmp.lt.s32.totalorder %s419_s20, %s415_s11 }
  0x21   : > { %p417_p1 = pnand %p416_p0, %p348_p13 }
  0x22   : > { %p422_p5 = por %p421_p4, %p420_p3 }
  0x23   : > { %p418_p2 = pneg %p417_p1 }
  0x25   : > { %p423_p7 = pnand %p422_p5, %p418_p2 }
  0x27   : > { %426 = shalt.err (!%p423_p7)
}
  0x28   : > { %s427_s27 = scalar_lea.vmem %s601_s10, %s588_s29  ;;  %s507_s28 = smov [#allocation2]  }
  0x29   : > { %p428_p8 = scmp.ne.s32.totalorder %s601_s10, %s427_s27  ;;  %s431_s30 = sshll.u32 %s507_s28, 4  ;;  %s432_s30 = int_to_ptr.vmem [resolvable:$false] %s431_s30 }
  0x2a   : > { %s433_s5 = scalar_lea.vmem %s432_s30, 512  ;;  %p434_p0 = scmp.lt.s32.totalorder %s601_s10, %s432_s30 }
  0x2b   : > { %p429_p11 = pnand %p428_p8, %p348_p13  ;;  %p435_p1 = scmp.lt.s32.totalorder %s433_s5, %s427_s27 }
  0x2d   : > { %p430_p12 = pneg %p429_p11  ;;  %p436_p10 = por %p435_p1, %p434_p0 }
  0x2f   : > { %p437_p3 = pnand %p436_p10, %p430_p12 }
  0x31   : > { %440 = shalt.err (!%p437_p3)
}
  0x32   : > { %s508_s6 = smov 128   ;;  %s509_s7 = smov 8  }
  0x33   : > { %160 = dma.hbm_to_vmem [thread:$0]  (%p348_p13), %s599_s9, %s588_s29, %s601_s10, %s591_s4, %s508_s6, %s508_s6, %s509_s7  }
  0x34 PF: > { %p352_p2 = scmp.ge.s32.totalorder %s505_s15, 1  ;;  %p162_p4 = scmp.lt.s32.totalorder %s505_s15, 4 }
  0x36   : > { %p163_p5 = pnand %p352_p2, %p162_p4 }
  0x37   : > { %s630_s8 = sand.u32 (!%p163_p5), 1, %s497_s13  }
  0x38   : > { %166 = sbr.rel (%p163_p5) target bundleno = 401 (0x191), region = 32  ;;  %s353_s11 = sshll.u32 (!%p163_p5), %s630_s8, 4 }
  0x39   : > { %s169_s17 = scalar_lea.sflag (!%p163_p5), [#allocation3], %s630_s8  ;;  %s172_s19 = scalar_lea.vmem (!%p163_p5), [#allocation2], %s353_s11 }
  0x3d   : > { %484 = dma.done.wait (%p572_p6), %s169_s17, 256  }
  0x3e   : > { %486 = vsyncadd (%p572_p6), %s169_s17, 4294967040  ;;  %v205_v0 = vld [vmem:[%s172_s19] sm:$0xff]  ;;  %v206_v1 = vld [vmem:[%s172_s19 + $0x8] sm:$0xff]  ;;  %s194_s10 = scalar_lea.vmem [#allocation5], %s353_s11  ;;  %s250_s20 = scalar_lea.sflag [#allocation4], %s630_s8 }
  0x3f   : > { %207 = vadd.xlane.f32.xlu0 %v205_v0  ;;  %v355_v17 = vld [vmem:[%s709_s1] ss:$0 sm:$0xff]  ;;  %s358_s25 = sshll.u32 (%p577_p9), %s554_s16, 1 }
  0x40   : > { %v356_v19 = vld [vmem:[%s710_s2] ss:$0 sm:$0xff]  ;;  %s258_s26 = ssub.s32 (%p577_p9), 5, %s358_s25 }
  0x41   : > { %p259_p6 = scmp.lt.s32.totalorder (%p577_p9), %s258_s26, 2 }
  0x43   : > { %209 = vadd.xlane.f32.xlu0 %v206_v1 }
  0xc8   : > { %v208_v2 = vpop.xlane.xlu0 %207 }
  0xc9   : > { %v211_v3 = vmul.f32 0.0078125, %v208_v2 }
  0xcb   : > { %v213_v4 = vsub.f32 %v205_v0, %v211_v3 }
  0xcc   : > { %v210_v5 = vpop.xlane.xlu0 %209 }
  0xcd   : > { %v212_v6 = vmul.f32 0.0078125, %v210_v5  ;;  %v215_v7 = vmul.f32 %v213_v4, %v213_v4 }
  0xcf   : > { %v214_v8 = vsub.f32 %v206_v1, %v212_v6  ;;  %217 = vadd.xlane.f32.xlu1 %v215_v7 }
  0xd1   : > { %v216_v9 = vmul.f32 %v214_v8, %v214_v8 }
  0xd3   : > { %219 = vadd.xlane.f32.xlu1 %v216_v9 }
 0x158   : > { %v218_v10 = vpop.xlane.xlu1 %217 }
 0x159   : > { %v221_v11 = vmul.f32 0.0078125, %v218_v10 }
 0x15b   : > { %v223_v12 = vadd.f32 1e-05, %v221_v11 }
 0x15c   : > { %v220_v13 = vpop.xlane.xlu1 %219 }
 0x15d   : > { %411 = vrsqrt.f32 %v223_v12  ;;  %v222_v14 = vmul.f32 0.0078125, %v220_v13 }
 0x15f   : > { %v224_v15 = vadd.f32 1e-05, %v222_v14 }
 0x161   : > { %413 = vrsqrt.f32 %v224_v15 }
 0x16a   : > { %v412_v16 = vpop.eup %411 }
 0x16b   : > { %v227_v18 = vmul.f32 %v412_v16, %v213_v4 }
 0x16d   : > { %v236_v20 = vmul.f32 %v355_v17, %v227_v18 }
 0x16e   : > { %v414_v21 = vpop.eup %413 }
 0x16f   : > { %v245_v22 = vadd.f32 %v356_v19, %v236_v20  ;;  %v228_v23 = vmul.f32 %v414_v21, %v214_v8 }
 0x171   : > { %247 = vst [vmem:[%s194_s10] sm:$0xff] %v245_v22  ;;  %v237_v24 = vmul.f32 %v355_v17, %v228_v23  ;;  %256 = sbr.rel (!%p577_p9) target bundleno = 401 (0x191), region = 40 }
 0x173   : > { %v246_v25 = vadd.f32 %v356_v19, %v237_v24 }
 0x175   : > { %248 = vst [vmem:[%s194_s10 + $0x8] sm:$0xff] %v246_v25 }
 0x176   : > { %s723_s26 = smov (!%p259_p6, %s258_s26), 2 }
 0x177   : > { %s652_s27 = sshll.u32 %s723_s26, 7 }
 0x178   : > { %s263_s28 = ssub.s32 256, %s652_s27 }
 0x179   : > { %264 = vsyncadd %s250_s20, %s263_s28  ;;  %p360_p10 = scmp.ne.s32.totalorder %s652_s27, 0  ;;  %s367_s30 = sshll.u32 %s554_s16, 8 }
 0x17a   : > { %s662_s6 = scalar_lea.hbm %s711_s3, %s367_s30  ;;  %s269_s7 = sshll.u32 %s194_s10, 4  ;;  %s664_s7 = int_to_ptr.vmem [resolvable:$true] %s269_s7 }
 0x17b   : > { %s441_s11 = scalar_lea.vmem %s664_s7, %s652_s27  ;;  %s510_s17 = smov [#allocation5]  }
 0x17c   : > { %p442_p9 = scmp.ne.s32.totalorder %s664_s7, %s441_s11  ;;  %s445_s19 = sshll.u32 %s510_s17, 4  ;;  %s446_s19 = int_to_ptr.vmem [resolvable:$false] %s445_s19 }
 0x17d   : > { %s447_s16 = scalar_lea.vmem %s446_s19, 512  ;;  %p448_p8 = scmp.lt.s32.totalorder %s664_s7, %s446_s19 }
 0x17e   : > { %p443_p13 = pnand %p442_p9, %p360_p10  ;;  %p449_p11 = scmp.lt.s32.totalorder %s447_s16, %s441_s11 }
 0x180   : > { %p444_p7 = pneg %p443_p13  ;;  %p450_p12 = por %p449_p11, %p448_p8 }
 0x182   : > { %p451_p0 = pnand %p450_p12, %p444_p7 }
 0x184   : > { %454 = shalt.err (!%p451_p0)
}
 0x185   : > { %s455_s22 = scalar_lea.hbm %s662_s6, %s652_s27  ;;  %s459_s9 = scalar_lea.hbm %s711_s3, 640 }
 0x186   : > { %p456_p1 = scmp.ne.s32.totalorder %s662_s6, %s455_s22  ;;  %p460_p4 = scmp.lt.s32.totalorder %s662_s6, %s711_s3 }
 0x187   : > { %p461_p5 = scmp.lt.s32.totalorder %s459_s9, %s455_s22 }
 0x188   : > { %p457_p3 = pnand %p456_p1, %p360_p10 }
 0x189   : > { %p462_p6 = por %p461_p5, %p460_p4 }
 0x18a   : > { %p458_p2 = pneg %p457_p3 }
 0x18c   : > { %p463_p9 = pnand %p462_p6, %p458_p2 }
 0x18e   : > { %466 = shalt.err (!%p463_p9)
}
 0x18f   : > { %s511_s26 = smov 128   ;;  %s512_s28 = smov 8  }
 0x190   : > { %275 = dma.vmem_to_hbm [thread:$0]  (%p360_p10), %s664_s7, %s652_s27, %s662_s6, %s250_s20, %s511_s26, %s511_s26, %s512_s28  }
 0x191 PF: > { %p374_p13 = scmp.ge.s32.totalorder %s505_s15, 2  ;;  %s284_s30 = sand.u32 1, %s493_s12  }
 0x192   : > { %p715_p7 = scmp.ne.s32.totalorder %s714_s24, 0  ;;  %s285_s23 = scalar_lea.sflag [#allocation4], %s284_s30 }
 0x194   : > { %p371_p8 = pnand %p374_p13, %p715_p7 }
 0x196   : > { %p372_p11 = pneg %p371_p8 }
 0x198   : > { %488 = dma.done.wait (%p372_p11), %s285_s23, 256  }
 0x199   : > { %490 = vsyncadd (%p372_p11), %s285_s23, 4294967040  ;;  %p16_p12 = scmp.ge.s32.totalorder %s558_s18, 5   ;;  %s716_s12 = smov %s497_s13 }
 0x19a   : > { %s717_s13 = smov %s501_s14  ;;  %s718_s14 = smov %s570_s21 }
 0x19b   : > { %s719_s15 = smov %s558_s18  ;;  %18 = sbr.rel (!%p16_p12) target bundleno = 5 (0x5), region = 77 }
 0x1a0   :  { %290 = vsyncpa [#allocation3], 1 }
 0x1a1   :  { %292 = vsyncpa [#allocation3 + $0x1], 1 }
 0x1a2   :  { %293 = vsyncpa [#allocation4], 1 }
 0x1a3   :  { %295 = vsyncpa [#allocation4 + $0x1], 1 }

</bundles_post_ra>
